<compile_context>
chip_gen: v7x
topology: tpu7x:2x2x1
jax: 0.10.0
libtpu: 0.0.40
codegen_flags: <defaults>
</compile_context>

<pallas_src>
import functools

import jax
import jax.numpy as jnp
from jax.experimental import pallas as pl
from jax.experimental.pallas import tpu as pltpu


# ----------------------------------------------------------------------------
# Pallas kernel: fused 3x3 conv (im2col + matmul + bias) for one batch element
# ----------------------------------------------------------------------------
def _conv3x3_kernel(x_ref, w_ref, b_ref, o_ref, *, W):
    # x_ref: (Cin, L)        L = (H+2)*W + 2 : H-padded, flattened, flat-padded
    # w_ref: (9, Cout, Cin)  per-tap weights, tap t = kh*3 + kw
    # b_ref: (Cout, 1)
    # o_ref: (Cout, H*W)     lane-dense output block (Cout on sublanes)
    HW = o_ref.shape[-1]
    cout = o_ref.shape[0]

    # Column (w) coordinate of every output position, for border masks.
    col = jax.lax.broadcasted_iota(jnp.int32, (1, HW), 1) % W
    not_first_col = col != 0          # kw=0 tap wraps into previous row at w=0
    not_last_col = col != (W - 1)     # kw=2 tap wraps into next row at w=W-1

    acc = jnp.zeros((cout, HW), jnp.float32)
    for kh in range(3):
        for kw in range(3):
            t = kh * 3 + kw
            s = kh * W + kw                   # static lane offset of this tap
            xt = x_ref[:, s:s + HW]           # (Cin, HW) shifted window in VMEM
            if kw == 0:
                xt = jnp.where(not_first_col, xt, 0.0)
            elif kw == 2:
                xt = jnp.where(not_last_col, xt, 0.0)
            # (Cout, Cin) @ (Cin, HW): spatial axis stays on the lanes.
            acc = acc + jnp.dot(w_ref[t], xt, preferred_element_type=jnp.float32)

    o_ref[...] = (acc + b_ref[...]).astype(o_ref.dtype)


# ----------------------------------------------------------------------------
# Wrapper: Conv2d(Cin, Cout, kernel=3, stride=1, padding=1, bias=True), NCHW
# ----------------------------------------------------------------------------
@jax.jit
def _conv2d_3x3_pallas(x, weight, bias):
    """x: (N, Cin, H, W); weight: (Cout, Cin, 3, 3); bias: (Cout,) -> NCHW."""
    N, Cin, H, W = x.shape
    Cout = weight.shape[0]
    HW = H * W
    L = (H + 2) * W + 2

    # Cheap input-sized glue (no im2col amplification): pad H by one zero row
    # each side, flatten (H, W), pad the flat stream by one element each side
    # so every tap window [kh*W + kw, kh*W + kw + HW) stays in bounds.
    xh = jnp.pad(x, ((0, 0), (0, 0), (1, 1), (0, 0)))
    xp = jnp.pad(xh.reshape(N, Cin, (H + 2) * W), ((0, 0), (0, 0), (1, 1)))

    # weight (Cout, Cin, 3, 3) -> (9, Cout, Cin), tap t = kh*3 + kw.
    w_taps = jnp.transpose(weight, (2, 3, 0, 1)).reshape(9, Cout, Cin)
    b_mat = bias.reshape(Cout, 1)

    kernel = functools.partial(_conv3x3_kernel, W=W)
    out = pl.pallas_call(
        kernel,
        out_shape=jax.ShapeDtypeStruct((N, Cout, HW), x.dtype),
        grid_spec=pltpu.PrefetchScalarGridSpec(
            num_scalar_prefetch=0,
            grid=(N,),  # one image per step; shards across v7x's 2 TensorCores
            in_specs=[
                pl.BlockSpec((None, Cin, L), lambda n: (n, 0, 0)),
                pl.BlockSpec((9, Cout, Cin), lambda n: (0, 0, 0)),
                pl.BlockSpec((Cout, 1), lambda n: (0, 0)),
            ],
            out_specs=pl.BlockSpec((None, Cout, HW), lambda n: (n, 0, 0)),
        ),
        compiler_params=pltpu.CompilerParams(
            dimension_semantics=("parallel",),
        ),
    )(xp, w_taps, b_mat)

    # (N, Cout, H*W) -> NCHW is a free reshape (no transpose needed).
    return out.reshape(N, Cout, H, W)


class ConvModule:
    """Conv2d(cin, cout, kernel_size=3, stride=1, padding=1, bias=True)."""

    def __init__(self, cin, cout, key):
        kw, kb = jax.random.split(key)
        # PyTorch Conv2d weight layout: (Cout, Cin, Kh, Kw)
        self.weight = jax.random.normal(kw, (cout, cin, 3, 3), jnp.float32) * 0.1
        self.bias = jax.random.normal(kb, (cout,), jnp.float32) * 0.1
        self.cin, self.cout = cin, cout

    def state_dict(self):
        return {"weight": self.weight, "bias": self.bias}

    def __call__(self, x_nchw):
        assert x_nchw.shape[1] == self.cin
        return _conv2d_3x3_pallas(x_nchw, self.weight, self.bias)


# ----------------------------------------------------------------------------
# DistModule: broadcast params from rank 0 at init, delegate forward
# ----------------------------------------------------------------------------
def broadcast_params(model):
    """Broadcast model parameters from rank 0.

    Single-device setting: the rank-0 broadcast is an identity (all 'ranks'
    already hold the deterministically initialized params).
    # TODO(synk): on a real multi-chip mesh this would be a
    # pltpu.make_async_remote_copy ring broadcast keyed on collective_id.
    """
    for _ in model.state_dict().values():
        pass  # identity broadcast on a single device


class DistModule:
    def __init__(self, module):
        self.module = module
        broadcast_params(self.module)
        self.training = True

    def forward(self, *inputs, **kwargs):
        return self.module(*inputs, **kwargs)

    def __call__(self, *inputs, **kwargs):
        return self.forward(*inputs, **kwargs)

    def train(self, mode=True):
        self.training = mode
        return self


# ----------------------------------------------------------------------------
if __name__ == "__main__":
    key = jax.random.PRNGKey(0)
    k_in, k_mod = jax.random.split(key)

    N, Cin, H, W = 2, 4, 16, 16
    Cout = 8
    x = jax.random.normal(k_in, (N, Cin, H, W), jnp.float32)

    inner = ConvModule(Cin, Cout, k_mod)
    model = DistModule(inner)
    model.train(True)

    y = model(x)
    y = jax.block_until_ready(y)

    # Reference check against XLA's conv (NCHW, OIHW, SAME padding) + bias.
    y_ref = jax.lax.conv_general_dilated(
        x, inner.weight, window_strides=(1, 1), padding="SAME",
        dimension_numbers=("NCHW", "OIHW", "NCHW"),
    ) + inner.bias.reshape(1, Cout, 1, 1)

    assert y.shape == (N, Cout, H, W)
    assert jnp.max(jnp.abs(y - y_ref)) < 1e-4

    print("KERNEL_OK")
</pallas_src>

<mosaic_0001>
module attributes {stable_mosaic.version = 11 : i64} {
  func.func @_conv3x3_kernel(%arg0: i32, %arg1: memref<1x4x290xf32, #tpu.memory_space<vmem>>, %arg2: memref<9x8x4xf32, #tpu.memory_space<vmem>>, %arg3: memref<8x1xf32, #tpu.memory_space<vmem>>, %arg4: memref<1x8x256xf32, #tpu.memory_space<vmem>>) attributes {dimension_semantics = [#tpu.dimension_semantics<parallel>], iteration_bounds = array<i64: 2>, scalar_prefetch = 0 : i64, scratch_operands = 0 : i64, tpu.core_type = #tpu.core_type<tc>, window_params = [{transform_indices = @transform_0, window_bounds = array<i64: 1, 4, 290>}, {pipeline_mode = #tpu.pipeline_mode<synchronous>, transform_indices = @transform_1, window_bounds = array<i64: 9, 8, 4>}, {pipeline_mode = #tpu.pipeline_mode<synchronous>, transform_indices = @transform_2, window_bounds = array<i64: 8, 1>}, {transform_indices = @transform_3, window_bounds = array<i64: 1, 8, 256>}]} {
    %0 = tpu.iota {dimensions = array<i32: 1>} : vector<1x256xi32>
    %c16_i32 = arith.constant 16 : i32
    %c0_i32 = arith.constant 0 : i32
    %1 = arith.cmpi eq, %c16_i32, %c0_i32 : i32
    %c1_i32 = arith.constant 1 : i32
    %2 = arith.select %1, %c1_i32, %c16_i32 : i32
    %3 = vector.broadcast %2 : i32 to vector<1x256xi32>
    %4 = arith.remsi %0, %3 : vector<1x256xi32>
    %c0_i32_0 = arith.constant 0 : i32
    %5 = vector.broadcast %c0_i32_0 : i32 to vector<1x256xi32>
    %6 = arith.cmpi ne, %4, %5 : vector<1x256xi32>
    %c0_i32_1 = arith.constant 0 : i32
    %7 = vector.broadcast %c0_i32_1 : i32 to vector<1x256xi32>
    %8 = arith.cmpi slt, %4, %7 : vector<1x256xi32>
    %c0_i32_2 = arith.constant 0 : i32
    %9 = arith.cmpi slt, %2, %c0_i32_2 : i32
    %10 = vector.broadcast %9 : i1 to vector<1x256xi1>
    %11 = vector.broadcast %10 : vector<1x256xi1> to vector<1x256xi1>
    %12 = arith.xori %8, %11 : vector<1x256xi1>
    %13 = arith.andi %12, %6 : vector<1x256xi1>
    %14 = vector.broadcast %2 : i32 to vector<1x256xi32>
    %15 = arith.addi %4, %14 : vector<1x256xi32>
    %16 = arith.select %13, %15, %4 : vector<1x256xi1>, vector<1x256xi32>
    %c0_i32_3 = arith.constant 0 : i32
    %17 = vector.broadcast %c0_i32_3 : i32 to vector<1x256xi32>
    %18 = arith.cmpi ne, %16, %17 : vector<1x256xi32>
    %c15_i32 = arith.constant 15 : i32
    %19 = vector.broadcast %c15_i32 : i32 to vector<1x256xi32>
    %20 = arith.cmpi ne, %16, %19 : vector<1x256xi32>
    %cst = arith.constant 0.000000e+00 : f32
    %21 = vector.broadcast %cst : f32 to vector<8x256xf32>
    %c0 = arith.constant 0 : index
    %c0_4 = arith.constant 0 : index
    %c0_5 = arith.constant 0 : index
    %22 = vector.load %arg1[%c0, %c0_4, %c0_5] : memref<1x4x290xf32, #tpu.memory_space<vmem>>, vector<1x4x256xf32>
    %23 = vector.shape_cast %22 : vector<1x4x256xf32> to vector<4x256xf32>
    %cst_6 = arith.constant 0.000000e+00 : f32
    %24 = vector.shape_cast %18 : vector<1x256xi1> to vector<1x256xi1>
    %25 = vector.broadcast %24 : vector<1x256xi1> to vector<4x256xi1>
    %26 = vector.broadcast %cst_6 : f32 to vector<4x256xf32>
    %27 = arith.select %25, %23, %26 : vector<4x256xi1>, vector<4x256xf32>
    %c0_7 = arith.constant 0 : index
    %c0_8 = arith.constant 0 : index
    %c0_9 = arith.constant 0 : index
    %28 = vector.load %arg2[%c0_7, %c0_8, %c0_9] : memref<9x8x4xf32, #tpu.memory_space<vmem>>, vector<1x8x4xf32>
    %29 = vector.shape_cast %28 : vector<1x8x4xf32> to vector<8x4xf32>
    %cst_10 = arith.constant dense<0.000000e+00> : vector<8x256xf32>
    %30 = tpu.matmul %29, %27, %cst_10 {dimension_numbers = #tpu.dot_dimension_numbers<[1], [0], [0], [1], [0, 0, 1, 1], [], []>} : vector<8x4xf32>, vector<4x256xf32>, vector<8x256xf32> -> vector<8x256xf32>
    %31 = arith.addf %21, %30 : vector<8x256xf32>
    %c0_11 = arith.constant 0 : index
    %c0_12 = arith.constant 0 : index
    %c1 = arith.constant 1 : index
    %32 = vector.load %arg1[%c0_11, %c0_12, %c1] : memref<1x4x290xf32, #tpu.memory_space<vmem>>, vector<1x4x256xf32>
    %33 = vector.shape_cast %32 : vector<1x4x256xf32> to vector<4x256xf32>
    %c1_13 = arith.constant 1 : index
    %c0_14 = arith.constant 0 : index
    %c0_15 = arith.constant 0 : index
    %34 = vector.load %arg2[%c1_13, %c0_14, %c0_15] : memref<9x8x4xf32, #tpu.memory_space<vmem>>, vector<1x8x4xf32>
    %35 = vector.shape_cast %34 : vector<1x8x4xf32> to vector<8x4xf32>
    %cst_16 = arith.constant dense<0.000000e+00> : vector<8x256xf32>
    %36 = tpu.matmul %35, %33, %cst_16 {dimension_numbers = #tpu.dot_dimension_numbers<[1], [0], [0], [1], [0, 0, 1, 1], [], []>} : vector<8x4xf32>, vector<4x256xf32>, vector<8x256xf32> -> vector<8x256xf32>
    %37 = arith.addf %31, %36 : vector<8x256xf32>
    %c0_17 = arith.constant 0 : index
    %c0_18 = arith.constant 0 : index
    %c2 = arith.constant 2 : index
    %38 = vector.load %arg1[%c0_17, %c0_18, %c2] : memref<1x4x290xf32, #tpu.memory_space<vmem>>, vector<1x4x256xf32>
    %39 = vector.shape_cast %38 : vector<1x4x256xf32> to vector<4x256xf32>
    %cst_19 = arith.constant 0.000000e+00 : f32
    %40 = vector.shape_cast %20 : vector<1x256xi1> to vector<1x256xi1>
    %41 = vector.broadcast %40 : vector<1x256xi1> to vector<4x256xi1>
    %42 = vector.broadcast %cst_19 : f32 to vector<4x256xf32>
    %43 = arith.select %41, %39, %42 : vector<4x256xi1>, vector<4x256xf32>
    %c2_20 = arith.constant 2 : index
    %c0_21 = arith.constant 0 : index
    %c0_22 = arith.constant 0 : index
    %44 = vector.load %arg2[%c2_20, %c0_21, %c0_22] : memref<9x8x4xf32, #tpu.memory_space<vmem>>, vector<1x8x4xf32>
    %45 = vector.shape_cast %44 : vector<1x8x4xf32> to vector<8x4xf32>
    %cst_23 = arith.constant dense<0.000000e+00> : vector<8x256xf32>
    %46 = tpu.matmul %45, %43, %cst_23 {dimension_numbers = #tpu.dot_dimension_numbers<[1], [0], [0], [1], [0, 0, 1, 1], [], []>} : vector<8x4xf32>, vector<4x256xf32>, vector<8x256xf32> -> vector<8x256xf32>
    %47 = arith.addf %37, %46 : vector<8x256xf32>
    %c0_24 = arith.constant 0 : index
    %c0_25 = arith.constant 0 : index
    %c16 = arith.constant 16 : index
    %48 = vector.load %arg1[%c0_24, %c0_25, %c16] : memref<1x4x290xf32, #tpu.memory_space<vmem>>, vector<1x4x256xf32>
    %49 = vector.shape_cast %48 : vector<1x4x256xf32> to vector<4x256xf32>
    %cst_26 = arith.constant 0.000000e+00 : f32
    %50 = vector.shape_cast %18 : vector<1x256xi1> to vector<1x256xi1>
    %51 = vector.broadcast %50 : vector<1x256xi1> to vector<4x256xi1>
    %52 = vector.broadcast %cst_26 : f32 to vector<4x256xf32>
    %53 = arith.select %51, %49, %52 : vector<4x256xi1>, vector<4x256xf32>
    %c3 = arith.constant 3 : index
    %c0_27 = arith.constant 0 : index
    %c0_28 = arith.constant 0 : index
    %54 = vector.load %arg2[%c3, %c0_27, %c0_28] : memref<9x8x4xf32, #tpu.memory_space<vmem>>, vector<1x8x4xf32>
    %55 = vector.shape_cast %54 : vector<1x8x4xf32> to vector<8x4xf32>
    %cst_29 = arith.constant dense<0.000000e+00> : vector<8x256xf32>
    %56 = tpu.matmul %55, %53, %cst_29 {dimension_numbers = #tpu.dot_dimension_numbers<[1], [0], [0], [1], [0, 0, 1, 1], [], []>} : vector<8x4xf32>, vector<4x256xf32>, vector<8x256xf32> -> vector<8x256xf32>
    %57 = arith.addf %47, %56 : vector<8x256xf32>
    %c0_30 = arith.constant 0 : index
    %c0_31 = arith.constant 0 : index
    %c17 = arith.constant 17 : index
    %58 = vector.load %arg1[%c0_30, %c0_31, %c17] : memref<1x4x290xf32, #tpu.memory_space<vmem>>, vector<1x4x256xf32>
    %59 = vector.shape_cast %58 : vector<1x4x256xf32> to vector<4x256xf32>
    %c4 = arith.constant 4 : index
    %c0_32 = arith.constant 0 : index
    %c0_33 = arith.constant 0 : index
    %60 = vector.load %arg2[%c4, %c0_32, %c0_33] : memref<9x8x4xf32, #tpu.memory_space<vmem>>, vector<1x8x4xf32>
    %61 = vector.shape_cast %60 : vector<1x8x4xf32> to vector<8x4xf32>
    %cst_34 = arith.constant dense<0.000000e+00> : vector<8x256xf32>
    %62 = tpu.matmul %61, %59, %cst_34 {dimension_numbers = #tpu.dot_dimension_numbers<[1], [0], [0], [1], [0, 0, 1, 1], [], []>} : vector<8x4xf32>, vector<4x256xf32>, vector<8x256xf32> -> vector<8x256xf32>
    %63 = arith.addf %57, %62 : vector<8x256xf32>
    %c0_35 = arith.constant 0 : index
    %c0_36 = arith.constant 0 : index
    %c18 = arith.constant 18 : index
    %64 = vector.load %arg1[%c0_35, %c0_36, %c18] : memref<1x4x290xf32, #tpu.memory_space<vmem>>, vector<1x4x256xf32>
    %65 = vector.shape_cast %64 : vector<1x4x256xf32> to vector<4x256xf32>
    %cst_37 = arith.constant 0.000000e+00 : f32
    %66 = vector.shape_cast %20 : vector<1x256xi1> to vector<1x256xi1>
    %67 = vector.broadcast %66 : vector<1x256xi1> to vector<4x256xi1>
    %68 = vector.broadcast %cst_37 : f32 to vector<4x256xf32>
    %69 = arith.select %67, %65, %68 : vector<4x256xi1>, vector<4x256xf32>
    %c5 = arith.constant 5 : index
    %c0_38 = arith.constant 0 : index
    %c0_39 = arith.constant 0 : index
    %70 = vector.load %arg2[%c5, %c0_38, %c0_39] : memref<9x8x4xf32, #tpu.memory_space<vmem>>, vector<1x8x4xf32>
    %71 = vector.shape_cast %70 : vector<1x8x4xf32> to vector<8x4xf32>
    %cst_40 = arith.constant dense<0.000000e+00> : vector<8x256xf32>
    %72 = tpu.matmul %71, %69, %cst_40 {dimension_numbers = #tpu.dot_dimension_numbers<[1], [0], [0], [1], [0, 0, 1, 1], [], []>} : vector<8x4xf32>, vector<4x256xf32>, vector<8x256xf32> -> vector<8x256xf32>
    %73 = arith.addf %63, %72 : vector<8x256xf32>
    %c0_41 = arith.constant 0 : index
    %c0_42 = arith.constant 0 : index
    %c32 = arith.constant 32 : index
    %74 = vector.load %arg1[%c0_41, %c0_42, %c32] : memref<1x4x290xf32, #tpu.memory_space<vmem>>, vector<1x4x256xf32>
    %75 = vector.shape_cast %74 : vector<1x4x256xf32> to vector<4x256xf32>
    %cst_43 = arith.constant 0.000000e+00 : f32
    %76 = vector.shape_cast %18 : vector<1x256xi1> to vector<1x256xi1>
    %77 = vector.broadcast %76 : vector<1x256xi1> to vector<4x256xi1>
    %78 = vector.broadcast %cst_43 : f32 to vector<4x256xf32>
    %79 = arith.select %77, %75, %78 : vector<4x256xi1>, vector<4x256xf32>
    %c6 = arith.constant 6 : index
    %c0_44 = arith.constant 0 : index
    %c0_45 = arith.constant 0 : index
    %80 = vector.load %arg2[%c6, %c0_44, %c0_45] : memref<9x8x4xf32, #tpu.memory_space<vmem>>, vector<1x8x4xf32>
    %81 = vector.shape_cast %80 : vector<1x8x4xf32> to vector<8x4xf32>
    %cst_46 = arith.constant dense<0.000000e+00> : vector<8x256xf32>
    %82 = tpu.matmul %81, %79, %cst_46 {dimension_numbers = #tpu.dot_dimension_numbers<[1], [0], [0], [1], [0, 0, 1, 1], [], []>} : vector<8x4xf32>, vector<4x256xf32>, vector<8x256xf32> -> vector<8x256xf32>
    %83 = arith.addf %73, %82 : vector<8x256xf32>
    %c0_47 = arith.constant 0 : index
    %c0_48 = arith.constant 0 : index
    %c33 = arith.constant 33 : index
    %84 = vector.load %arg1[%c0_47, %c0_48, %c33] : memref<1x4x290xf32, #tpu.memory_space<vmem>>, vector<1x4x256xf32>
    %85 = vector.shape_cast %84 : vector<1x4x256xf32> to vector<4x256xf32>
    %c7 = arith.constant 7 : index
    %c0_49 = arith.constant 0 : index
    %c0_50 = arith.constant 0 : index
    %86 = vector.load %arg2[%c7, %c0_49, %c0_50] : memref<9x8x4xf32, #tpu.memory_space<vmem>>, vector<1x8x4xf32>
    %87 = vector.shape_cast %86 : vector<1x8x4xf32> to vector<8x4xf32>
    %cst_51 = arith.constant dense<0.000000e+00> : vector<8x256xf32>
    %88 = tpu.matmul %87, %85, %cst_51 {dimension_numbers = #tpu.dot_dimension_numbers<[1], [0], [0], [1], [0, 0, 1, 1], [], []>} : vector<8x4xf32>, vector<4x256xf32>, vector<8x256xf32> -> vector<8x256xf32>
    %89 = arith.addf %83, %88 : vector<8x256xf32>
    %c0_52 = arith.constant 0 : index
    %c0_53 = arith.constant 0 : index
    %c34 = arith.constant 34 : index
    %90 = vector.load %arg1[%c0_52, %c0_53, %c34] : memref<1x4x290xf32, #tpu.memory_space<vmem>>, vector<1x4x256xf32>
    %91 = vector.shape_cast %90 : vector<1x4x256xf32> to vector<4x256xf32>
    %cst_54 = arith.constant 0.000000e+00 : f32
    %92 = vector.shape_cast %20 : vector<1x256xi1> to vector<1x256xi1>
    %93 = vector.broadcast %92 : vector<1x256xi1> to vector<4x256xi1>
    %94 = vector.broadcast %cst_54 : f32 to vector<4x256xf32>
    %95 = arith.select %93, %91, %94 : vector<4x256xi1>, vector<4x256xf32>
    %c8 = arith.constant 8 : index
    %c0_55 = arith.constant 0 : index
    %c0_56 = arith.constant 0 : index
    %96 = vector.load %arg2[%c8, %c0_55, %c0_56] : memref<9x8x4xf32, #tpu.memory_space<vmem>>, vector<1x8x4xf32>
    %97 = vector.shape_cast %96 : vector<1x8x4xf32> to vector<8x4xf32>
    %cst_57 = arith.constant dense<0.000000e+00> : vector<8x256xf32>
    %98 = tpu.matmul %97, %95, %cst_57 {dimension_numbers = #tpu.dot_dimension_numbers<[1], [0], [0], [1], [0, 0, 1, 1], [], []>} : vector<8x4xf32>, vector<4x256xf32>, vector<8x256xf32> -> vector<8x256xf32>
    %99 = arith.addf %89, %98 : vector<8x256xf32>
    %c0_58 = arith.constant 0 : index
    %c0_59 = arith.constant 0 : index
    %100 = vector.load %arg3[%c0_58, %c0_59] : memref<8x1xf32, #tpu.memory_space<vmem>>, vector<8x1xf32>
    %101 = vector.broadcast %100 : vector<8x1xf32> to vector<8x256xf32>
    %102 = arith.addf %99, %101 : vector<8x256xf32>
    %c0_60 = arith.constant 0 : index
    %c0_61 = arith.constant 0 : index
    %c0_62 = arith.constant 0 : index
    %103 = vector.load %arg4[%c0_60, %c0_61, %c0_62] : memref<1x8x256xf32, #tpu.memory_space<vmem>>, vector<1x8x256xf32>
    %104 = vector.shape_cast %103 : vector<1x8x256xf32> to vector<8x256xf32>
    %105 = vector.shape_cast %102 : vector<8x256xf32> to vector<1x8x256xf32>
    tpu.vector_store %arg4[%c0_60, %c0_61, %c0_62], %105 {strides = array<i32>} : memref<1x8x256xf32, #tpu.memory_space<vmem>>, vector<1x8x256xf32>,
    return
  }
  func.func @transform_0(%arg0: i32) -> (i32, i32, i32) {
    %c0_i32 = arith.constant 0 : i32
    %c0_i32_0 = arith.constant 0 : i32
    %c0_i32_1 = arith.constant 0 : i32
    return %arg0, %c0_i32, %c0_i32_0 : i32, i32, i32
  }
  func.func @transform_1(%arg0: i32) -> (i32, i32, i32) {
    %c0_i32 = arith.constant 0 : i32
    %c0_i32_0 = arith.constant 0 : i32
    %c0_i32_1 = arith.constant 0 : i32
    %c0_i32_2 = arith.constant 0 : i32
    return %c0_i32, %c0_i32_0, %c0_i32_1 : i32, i32, i32
  }
  func.func @transform_2(%arg0: i32) -> (i32, i32) {
    %c0_i32 = arith.constant 0 : i32
    %c0_i32_0 = arith.constant 0 : i32
    %c0_i32_1 = arith.constant 0 : i32
    return %c0_i32, %c0_i32_0 : i32, i32
  }
  func.func @transform_3(%arg0: i32) -> (i32, i32, i32) {
    %c0_i32 = arith.constant 0 : i32
    %c0_i32_0 = arith.constant 0 : i32
    %c0_i32_1 = arith.constant 0 : i32
    return %arg0, %c0_i32, %c0_i32_0 : i32, i32, i32
  }
}

</mosaic_0001>

<bundles_post_ra>
// kernel: _conv2d_3x3_pallas.1
= control target key start
LH: loop header
LB: loop body
LE: loop exit
PB: predicated region body
PF: predicated region fallthrough
CT: control target
= control target key end

     0   :  { %s1278_s12 = smov 0   ;;  %s1446_s0 = inlined_call_operand.vmem [shape: f32[2,4,290], index: 0, kind: input, shape index: {}]   ;;  %s1447_s1 = inlined_call_operand.vmem [shape: f32[9,8,4], index: 1, kind: input, shape index: {}]   ;;  %s1448_s2 = inlined_call_operand.vmem [shape: f32[8,1], index: 2, kind: input, shape index: {}]   ;;  %s1449_s3 = inlined_call_operand.vmem [shape: f32[2,8,256], index: 3, kind: output, shape index: {}]  }
   0x1 LB: > { %s1157_s13 = sadd.s32 4294967295, %s1246_s12   ;;  %p1161_p0 = scmp.ge.s32.totalorder %s1246_s12, 1  ;;  %s1246_s12 = sphi %s1278_s12, %s13_s12  }
   0x2   : > { %p137_p1 = scmp.lt.s32.totalorder %s1246_s12, 3 }
   0x4   : > { %p138_p2 = pnand %p1161_p0, %p137_p1 }
   0x5   : > { %p161_p3 = scmp.lt.s32.totalorder (!%p138_p2), %s1157_s13, 1  ;;  %s1248_s18 = smov (!%p138_p2), 111   ;;  %v1249_v4 = vmov (!%p138_p2), 0.0   ;;  %v1255_v10 = vmov (!%p138_p2), 0   ;;  %v1092_v12 = vld [vmem:[%s1448_s2] sm:$0xff] (!%p138_p2)  ;;  %v171_v13 = vlaneseq (!%p138_p2)  ;;  %vm701_vm0 = vcmask (!%p138_p2), 900096  }
   0x6   : > { %141 = sbr.rel (%p138_p2) target bundleno = 398 (0x18e), region = 32  ;;  %681 = vmatprep.mubr.f32.mxu0 (!%p138_p2), %v1249_v4  ;;  %299 = vmatprep.mubr.f32.mxu1 (!%p138_p2), %v1249_v4  ;;  %s1250_s19 = smov (!%p138_p2), 110   ;;  %vm607_vm1 = vcmask (!%p138_p2), 908288   ;;  %vm230_vm2 = vcmask (!%p138_p2), 1043456   ;;  %vm226_vm4 = vcmask (!%p138_p2), 31744   ;;  %v1180_v28 = vld [vmem:[%s1447_s1 + $0x20] sm:$0xff] (!%p138_p2) }
   0x7   : > { %s1251_s20 = smov (!%p138_p2), 127   ;;  %s1252_s21 = smov (!%p138_p2), 96   ;;  %1238 = vset.pattern.permute.xlu0 (!%p138_p2), %v1255_v10  ;;  %v172_v14 = vand.u32 (!%p138_p2), 127, %v171_v13  ;;  %vm223_vm5 = vcmask (!%p138_p2), 1039360   ;;  %v1165_v40 = vld [vmem:[%s1447_s1 + $0x8] sm:$0xff] (!%p138_p2)  ;;  %vm803_vm9 = vcmask (!%p138_p2), 785408  }
   0x8   : > { %s1253_s22 = smov (!%p138_p2), 126   ;;  %s1254_s23 = smov (!%p138_p2), 95   ;;  %v1184_v43 = vld [vmem:[%s1447_s1 + $0x28] sm:$0xff] (!%p138_p2)  ;;  %vm401_vm10 = vcmask (!%p138_p2), 1031168   ;;  %v212_v53 = vld [vmem:[%s1447_s1] sm:$0xff] (!%p138_p2)  ;;  %v1188_v55 = vld [vmem:[%s1447_s1 + $0x30] sm:$0xff] (!%p138_p2) }
   0x9   : > { %s1256_s24 = smov (!%p138_p2), 112   ;;  %s1257_s25 = smov (!%p138_p2), 94   ;;  %v173_v17 = vadd.s32 (!%p138_p2), 128, %v172_v14  ;;  %v178_v21 = vand.u32 (!%p138_p2), 15, %v172_v14  ;;  %vm907_vm11 = vcmask (!%p138_p2), 777216   ;;  %v1172_v63 = vld [vmem:[%s1447_s1 + $0x10] sm:$0xff] (!%p138_p2) }
   0xa   : > { %vm503_vm12 = vcmask (!%p138_p2), 916480   ;;  %vm1001_vm13 = vcmask (!%p138_p2), 769024  }
   0xb   : > { %v185_v19 = vand.u32 (!%p138_p2), 15, %v173_v17  ;;  %vm1342_vm6 = vcmp.ne.s32.totalorder (!%p138_p2), %v178_v21, 15  ;;  %vm1359_vm8 = vcmp.ne.s32.totalorder (!%p138_p2), %v178_v21, 0 }
   0xd   : > { %s1459_s13 = smov (!%p161_p3, %s1157_s13), 1  ;;  %vm1330_vm3 = vcmp.ne.s32.totalorder %v185_v19, 15  ;;  %vm1355_vm7 = vcmp.ne.s32.totalorder %v185_v19, 0 }
   0xe   : > { %s1219_s14 = smul.u32 12, %s1459_s13 }
  0x10   : > { %s1292_s17 = scalar_lea.vmem %s1446_s0, %s1219_s14 }
  0x11   : > { %v595_v0 = vld [vmem:[%s1292_s17 + $0x8] sm:$0xf]  ;;  %v1296_v1 = vld [vmem:[%s1292_s17] sm:$0xff] }
  0x12   : > { %605 = vrot.lane.b32.xlu0 %v595_v0, %s1248_s18  ;;  %601 = vrot.lane.b32.xlu1 %v1296_v1, %s1248_s18  ;;  %v1301_v2 = vcombine.high %v1296_v1, %v1296_v1  ;;  %v691_v3 = vld [vmem:[%s1292_s17 + $0x8] sm:$0xf]  ;;  %v210_v44 = vsel %vm1359_vm8, %v1296_v1, 0.0 }
  0x13   : > { %v213_v5 = vld [vmem:[%s1292_s17 + $0x8] sm:$0xf] }
  0x14   : > { %v793_v6 = vld [vmem:[%s1292_s17 + $0x8] sm:$0xf]  ;;  %v211_v41 = vsel %vm1355_vm7, %v1301_v2, 0.0 }
  0x15   : > { %v387_v7 = vld [vmem:[%s1292_s17 + $0x8] sm:$0xf] }
  0x16   : > { %699 = vrot.lane.b32.xlu0 %v691_v3, %s1250_s19  ;;  %697 = vrot.lane.b32.xlu1 %v1301_v2, %s1250_s19  ;;  %v895_v8 = vld [vmem:[%s1292_s17 + $0x8] sm:$0xf] }
  0x17   : > { %v493_v9 = vld [vmem:[%s1292_s17 + $0x8] sm:$0xf] }
  0x18   : > { %v991_v11 = vld [vmem:[%s1292_s17 + $0x8] sm:$0xf] }
  0x1a   : > { %603 = vrot.lane.b32.xlu0 %v1301_v2, %s1248_s18  ;;  %219 = vrot.lane.b32.xlu1 %v1301_v2, %s1251_s20 }
  0x1e   : > { %221 = vrot.lane.b32.xlu0 %v213_v5, %s1251_s20  ;;  %695 = vrot.lane.b32.xlu1 %v1296_v1, %s1250_s19 }
  0x22   : > { %217 = vrot.lane.b32.xlu0 %v1296_v1, %s1251_s20  ;;  %799 = vrot.lane.b32.xlu1 %v1301_v2, %s1252_s21 }
  0x26   : > { %801 = vrot.lane.b32.xlu0 %v793_v6, %s1252_s21  ;;  %797 = vrot.lane.b32.xlu1 %v1296_v1, %s1252_s21  ;;  %s1202_s21 = sshll.u32 %s1459_s13, 4 }
  0x2a   : > { %397 = vrot.lane.b32.xlu0 %v1301_v2, %s1253_s22  ;;  %399 = vrot.lane.b32.xlu1 %v387_v7, %s1253_s22 }
  0x2e   : > { %395 = vrot.lane.b32.xlu0 %v1296_v1, %s1253_s22  ;;  %903 = vrot.lane.b32.xlu1 %v1301_v2, %s1254_s23 }
  0x32   : > { %905 = vrot.lane.b32.xlu0 %v895_v8, %s1254_s23  ;;  %901 = vrot.lane.b32.xlu1 %v1296_v1, %s1254_s23 }
  0x36   : > { %499 = vrot.lane.b32.xlu0 %v1301_v2, %s1256_s24  ;;  %501 = vrot.lane.b32.xlu1 %v493_v9, %s1256_s24 }
  0x3a   : > { %997 = vrot.lane.b32.xlu0 %v1301_v2, %s1257_s25  ;;  %999 = vrot.lane.b32.xlu1 %v991_v11, %s1257_s25  ;;  %v1192_v2 = vld [vmem:[%s1447_s1 + $0x38] sm:$0xff] }
  0x3e   : > { %497 = vrot.lane.b32.xlu0 %v1296_v1, %s1256_s24  ;;  %995 = vrot.lane.b32.xlu1 %v1296_v1, %s1257_s25  ;;  %s170_s24 = scalar_lea.vmem %s1449_s3, %s1202_s21 }
  0x42   : > { %1095 = vperm.xlu0 %1238, %v1092_v12  }
  0x84   : > { %v606_v15 = vpop.permute.xlu0 %605  ;;  %v602_v16 = vpop.permute.xlu1 %601 }
  0x88   : > { %v700_v18 = vpop.permute.xlu0 %699  ;;  %v698_v20 = vpop.permute.xlu1 %697 }
  0x89   : > { %v703_v23 = vsel %vm701_vm0, %v698_v20, %v700_v18 }
  0x8a   : > { %v707_v29 = vsel %vm1330_vm3, %v703_v23, 0.0 }
  0x8c   : > { %v604_v24 = vpop.permute.xlu0 %603  ;;  %v220_v25 = vpop.permute.xlu1 %219 }
  0x8d   : > { %v609_v26 = vsel %vm607_vm1, %v604_v24, %v606_v15  ;;  %v608_v27 = vsel %vm607_vm1, %v602_v16, %v604_v24  ;;  %v1176_v15 = vld [vmem:[%s1447_s1 + $0x18] sm:$0xff]  ;;  %v1196_v16 = vld [vmem:[%s1447_s1 + $0x40] sm:$0xff] }
  0x8e   : > { %1181 = vmatprep.subr.msk.mxu0 %vm230_vm2, %v609_v26 }
  0x8f   : > { %1182 = vmatpush1.msk.msra.mxu0 %vm230_vm2, %v608_v27 }
  0x90   : > { %1185 = vmatprep.subr.msk.mxu0 %vm230_vm2, %v707_v29  ;;  %v222_v31 = vpop.permute.xlu0 %221  ;;  %v696_v32 = vpop.permute.xlu1 %695  ;;  %1183 = vmatmul.mubr.msk.f32.vlgmr.msra.gmra.mrb[0].mxu0 %vm226_vm4, %v1180_v28 }
  0x91   : > { %v702_v33 = vsel %vm701_vm0, %v696_v32, %v698_v20  ;;  %v225_v34 = vsel %vm223_vm5, %v220_v25, %v222_v31  ;;  %783 = vmatprep.mubr.f32.mxu0 %v1249_v4 }
  0x92   : > { %v706_v35 = vsel %vm1342_vm6, %v702_v33, 0.0  ;;  %1166 = vmatprep.subr.msk.mxu1 %vm230_vm2, %v225_v34 }
  0x93   : > { %1186 = vmatpush1.msk.msra.mxu0 %vm230_vm2, %v706_v35 }
  0x94   : > { %v218_v37 = vpop.permute.xlu0 %217  ;;  %v800_v38 = vpop.permute.xlu1 %799 }
  0x95   : > { %v224_v42 = vsel %vm223_vm5, %v218_v37, %v220_v25 }
  0x96   : > { %1167 = vmatpush1.msk.msra.mxu1 %vm230_vm2, %v224_v42 }
  0x97   : > { %1168 = vmatmul.mubr.msk.f32.vlgmr.msra.gmra.mrb[0].mxu1 %vm226_vm4, %v1165_v40  ;;  %1169 = vmatprep.subr.msk.mxu1 %vm230_vm2, %v211_v41 }
  0x98   : > { %v802_v45 = vpop.permute.xlu0 %801  ;;  %v798_v46 = vpop.permute.xlu1 %797  ;;  %1187 = vmatmul.mubr.msk.f32.vlgmr.msra.gmra.mrb[0].mxu0 %vm226_vm4, %v1184_v43  ;;  %1170 = vmatpush1.msk.msra.mxu1 %vm230_vm2, %v210_v44 }
  0x99   : > { %v805_v47 = vsel %vm803_vm9, %v800_v38, %v802_v45  ;;  %v804_v48 = vsel %vm803_vm9, %v798_v46, %v800_v38  ;;  %379 = vmatprep.mubr.f32.mxu1 %v1249_v4  ;;  %885 = vmatprep.mubr.f32.mxu0 %v1249_v4 }
  0x9a   : > { %v809_v49 = vsel %vm1355_vm7, %v805_v47, 0.0  ;;  %v808_v50 = vsel %vm1359_vm8, %v804_v48, 0.0 }
  0x9b   : > { %1189 = vmatprep.subr.msk.mxu0 %vm230_vm2, %v809_v49 }
  0x9c   : > { %v398_v51 = vpop.permute.xlu0 %397  ;;  %1190 = vmatpush1.msk.msra.mxu0 %vm230_vm2, %v808_v50  ;;  %v400_v52 = vpop.permute.xlu1 %399 }
  0x9d   : > { %v403_v54 = vsel %vm401_vm10, %v398_v51, %v400_v52 }
  0x9e   : > { %v407_v56 = vsel %vm1330_vm3, %v403_v54, 0.0 }
  0x9f   : > { %1173 = vmatprep.subr.msk.mxu1 %vm230_vm2, %v407_v56  ;;  %1171 = vmatmul.mubr.msk.f32.vlgmr.msra.gmra.mrb[0].mxu1 %vm226_vm4, %v212_v53 }
  0xa0   : > { %v396_v57 = vpop.permute.xlu0 %395  ;;  %v904_v58 = vpop.permute.xlu1 %903  ;;  %1191 = vmatmul.mubr.msk.f32.vlgmr.msra.gmra.mrb[0].mxu0 %vm226_vm4, %v1188_v55  ;;  %483 = vmatprep.mubr.f32.mxu1 %v1249_v4 }
  0xa1   : > { %v402_v59 = vsel %vm401_vm10, %v396_v57, %v398_v51  ;;  %981 = vmatprep.mubr.f32.mxu0 %v1249_v4 }
  0xa2   : > { %v406_v60 = vsel %vm1342_vm6, %v402_v59, 0.0 }
  0xa3   : > { %1174 = vmatpush1.msk.msra.mxu1 %vm230_vm2, %v406_v60 }
  0xa4   : > { %v906_v61 = vpop.permute.xlu0 %905  ;;  %v902_v62 = vpop.permute.xlu1 %901 }
  0xa5   : > { %v909_v0 = vsel %vm907_vm11, %v904_v58, %v906_v61  ;;  %v908_v1 = vsel %vm907_vm11, %v902_v62, %v904_v58 }
  0xa6   : > { %1193 = vmatprep.subr.msk.mxu0 %vm230_vm2, %v909_v0 }
  0xa7   : > { %1194 = vmatpush1.msk.msra.mxu0 %vm230_vm2, %v908_v1  ;;  %1175 = vmatmul.mubr.msk.f32.vlgmr.msra.gmra.mrb[0].mxu1 %vm226_vm4, %v1172_v63 }
  0xa8   : > { %v500_v3 = vpop.permute.xlu0 %499  ;;  %v502_v5 = vpop.permute.xlu1 %501  ;;  %1195 = vmatmul.mubr.msk.f32.vlgmr.msra.gmra.mrb[0].mxu0 %vm226_vm4, %v1192_v2  ;;  %585 = vmatprep.mubr.f32.mxu1 %v1249_v4 }
  0xa9   : > { %v505_v6 = vsel %vm503_vm12, %v500_v3, %v502_v5  ;;  %1083 = vmatprep.mubr.f32.mxu0 %v1249_v4 }
  0xaa   : > { %v509_v7 = vsel %vm1355_vm7, %v505_v6, 0.0 }
  0xab   : > { %1177 = vmatprep.subr.msk.mxu1 %vm230_vm2, %v509_v7 }
  0xac   : > { %v998_v8 = vpop.permute.xlu0 %997  ;;  %v1000_v9 = vpop.permute.xlu1 %999 }
  0xad   : > { %v1003_v10 = vsel %vm1001_vm13, %v998_v8, %v1000_v9 }
  0xae   : > { %v1007_v11 = vsel %vm1330_vm3, %v1003_v10, 0.0 }
  0xaf   : > { %1197 = vmatprep.subr.msk.mxu0 %vm230_vm2, %v1007_v11 }
  0xb0   : > { %v498_v12 = vpop.permute.xlu0 %497  ;;  %v996_v13 = vpop.permute.xlu1 %995 }
  0xb1   : > { %v504_v14 = vsel %vm503_vm12, %v498_v12, %v500_v3  ;;  %v1002_v4 = vsel %vm1001_vm13, %v996_v13, %v998_v8 }
  0xb2   : > { %v508_v17 = vsel %vm1359_vm8, %v504_v14, 0.0  ;;  %v1006_v18 = vsel %vm1342_vm6, %v1002_v4, 0.0 }
  0xb3   : > { %1178 = vmatpush1.msk.msra.mxu1 %vm230_vm2, %v508_v17  ;;  %1198 = vmatpush1.msk.msra.mxu0 %vm230_vm2, %v1006_v18 }
  0xb4   : > { %1179 = vmatmul.mubr.msk.f32.vlgmr.msra.gmra.mrb[0].mxu1 %vm226_vm4, %v1176_v15  ;;  %1199 = vmatmul.mubr.msk.f32.vlgmr.msra.gmra.mrb[0].mxu0 %vm226_vm4, %v1196_v16 }
  0xc1   : > { %v1096_v19 = vpop.permute.xlu0 %1095 }
 0x187   : > { %v587_v20 = vpop.f32.mrb[0].mxu1  ;;  %v1085_v21 = vpop.f32.mrb[0].mxu0 }
 0x188   : > { %v1203_v22 = vadd.f32 %v1085_v21, %v587_v20  ;;  %v589_v23 = vpop.f32.mrb[1].mxu1  ;;  %v1087_v24 = vpop.f32.mrb[1].mxu0 }
 0x189   : > { %v1204_v25 = vadd.f32 %v1087_v24, %v589_v23 }
 0x18a   : > { %v1098_v26 = vadd.f32 %v1203_v22, %v1096_v19 }
 0x18b   : > { %v1099_v27 = vadd.f32 %v1204_v25, %v1096_v19 }
 0x18c   : > { %1100 = vst [vmem:[%s170_s24] sm:$0xff] %v1098_v26 }
 0x18d   : > { %1101 = vst [vmem:[%s170_s24 + $0x8] sm:$0xff] %v1099_v27 }
 0x18e PF: > { %s13_s12 = sadd.s32 1, %s1246_s12  }
 0x18f   : > { %p10_p4 = scmp.ge.s32.totalorder %s13_s12, 4  }
 0x191   :  { %12 = sbr.rel (!%p10_p4) target bundleno = 1 (0x1), region = 70 }

</bundles_post_ra>
